<compile_context>
chip_gen: v6e
topology: v6e:2x2x1
jax: 0.10.0
libtpu: 0.0.40
codegen_flags: <defaults>
</compile_context>

<pallas_src>
import jax
import jax.numpy as jnp
from jax.experimental import pallas as pl
from jax.experimental.pallas import tpu as pltpu


def _round_up(n, m):
    return ((n + m - 1) // m) * m


def make_conv_sigmoid(B, C, H, W, K):
    OH, OW = H - K + 1, W - K + 1
    OH_pad = _round_up(OH, 8)  # full-sublane accumulator / unmasked-row store

    # >=2 independent parallel grid steps when the batch allows it (v7x has 2 TCs);
    # otherwise fold the whole batch into a single step (1-TC chips).
    num_steps = 2 if (B >= 2 and B % 2 == 0) else 1
    B_per = B // num_steps

    def kernel(x_ref, w_ref, o_ref):
        # x_ref: (B_per, C, H, W)    VMEM  (true width, no host-side padding)
        # w_ref: (C*K*K,)            SMEM  flat OIHW weights of the single output channel
        # o_ref: (B_per, OH_pad, OW) VMEM
        for b in range(B_per):
            # K independent row-partial accumulators (breaks the serial VALU chain):
            #   T[ki][r, x] = sum_{c,kj} w[c,ki,kj] * x[c, r, x + kj]  for all rows r.
            T = [jnp.zeros((H, OW), jnp.float32) for _ in range(K)]
            for kj in range(K):                      # K lane offsets, reused over c and ki
                for c in range(C):
                    # Ref-level slice -> offset vector load, not an in-register rotate.
                    plane = x_ref[b, c, :, kj:kj + OW]           # (H, OW)
                    for ki in range(K):
                        w = w_ref[c * K * K + ki * K + kj]       # scalar from SMEM
                        T[ki] = T[ki] + w * plane
            # Combine: out[y, x] = sum_ki T[ki][y + ki, x]  -- only K-1 sublane shifts.
            acc = T[0][:OH, :]
            for ki in range(1, K):
                acc = acc + T[ki][ki:ki + OH, :]
            if OH_pad > OH:   # pad to full sublanes; junk rows are stripped in the wrapper
                acc = jnp.concatenate(
                    [acc, jnp.zeros((OH_pad - OH, OW), jnp.float32)], axis=0)
            o_ref[b] = jax.nn.sigmoid(acc)

    # VMEM budget: derive from the actual chip instead of hard-coding 32 MiB.
    try:
        vmem_cap = int(pltpu.get_tpu_info().vmem_capacity_bytes)
    except Exception:
        vmem_cap = 128 * 1024 * 1024
    vmem_limit = int(min(vmem_cap // 2, 64 * 1024 * 1024))

    fn = pl.pallas_call(
        kernel,
        out_shape=jax.ShapeDtypeStruct((B, OH_pad, OW), jnp.float32),
        grid=(num_steps,),
        in_specs=[
            pl.BlockSpec((B_per, C, H, W), lambda g: (g, 0, 0, 0)),
            pl.BlockSpec((C * K * K,), lambda g: (0,),
                         memory_space=pltpu.MemorySpace.SMEM),
        ],
        out_specs=pl.BlockSpec((B_per, OH_pad, OW), lambda g: (g, 0, 0)),
        compiler_params=pltpu.CompilerParams(
            dimension_semantics=("parallel",),       # batch halves are independent
            vmem_limit_bytes=vmem_limit),
    )
    return fn, OH_pad


def discriminator_forward(x, weight):
    """x: (B, 3, H, W) f32, weight: (1, 3, K, K) f32 -> (B, 1, H-K+1, W-K+1) f32."""
    B, C, H, W = x.shape
    Cout, Cin, K, K2 = weight.shape
    assert Cout == 1 and Cin == C and K == K2
    OH, OW = H - K + 1, W - K + 1

    fn, OH_pad = make_conv_sigmoid(B, C, H, W, K)
    out = fn(x.astype(jnp.float32), weight.reshape(-1).astype(jnp.float32))
    # Strip sublane-padding rows and restore the (B, 1, OH, OW) NCHW layout.
    return out[:, :OH, :][:, None, :, :]


def reference_forward(x, weight):
    y = jax.lax.conv_general_dilated(
        x, weight, window_strides=(1, 1), padding="VALID",
        dimension_numbers=("NCHW", "OIHW", "NCHW"))
    return jax.nn.sigmoid(y)


if __name__ == "__main__":
    key = jax.random.PRNGKey(0)
    kx, kw = jax.random.split(key)

    B, C, H, W, K = 2, 3, 16, 16, 4
    x = jax.random.normal(kx, (B, C, H, W), dtype=jnp.float32)
    # Deterministic synthetic conv weight (matches nn.Conv2d(3, 1, 4, 1, 0, bias=False)).
    weight = 0.1 * jax.random.normal(kw, (1, C, K, K), dtype=jnp.float32)

    out = discriminator_forward(x, weight)
    out = jax.block_until_ready(out)

    ref = reference_forward(x, weight)
    assert out.shape == (B, 1, H - K + 1, W - K + 1), out.shape
    assert jnp.allclose(out, ref, atol=1e-5, rtol=1e-5), "mismatch vs reference conv+sigmoid"

    print("KERNEL_OK")
</pallas_src>

<mosaic_0001>
module attributes {stable_mosaic.version = 11 : i64} {
  func.func @kernel(%arg0: i32, %arg1: memref<1x3x16x16xf32, #tpu.memory_space<vmem>>, %arg2: memref<48xf32, #tpu.memory_space<smem>>, %arg3: memref<1x16x13xf32, #tpu.memory_space<vmem>>) attributes {dimension_semantics = [#tpu.dimension_semantics<parallel>], iteration_bounds = array<i64: 2>, scalar_prefetch = 0 : i64, scratch_operands = 0 : i64, tpu.core_type = #tpu.core_type<tc>, window_params = [{transform_indices = @transform_0, window_bounds = array<i64: 1, 3, 16, 16>}, {transform_indices = @transform_1, window_bounds = array<i64: 48>}, {transform_indices = @transform_2, window_bounds = array<i64: 1, 16, 13>}]} {
    %cst = arith.constant 0.000000e+00 : f32
    %0 = vector.broadcast %cst : f32 to vector<16x13xf32>
    %cst_0 = arith.constant 0.000000e+00 : f32
    %1 = vector.broadcast %cst_0 : f32 to vector<16x13xf32>
    %cst_1 = arith.constant 0.000000e+00 : f32
    %2 = vector.broadcast %cst_1 : f32 to vector<16x13xf32>
    %cst_2 = arith.constant 0.000000e+00 : f32
    %3 = vector.broadcast %cst_2 : f32 to vector<16x13xf32>
    %c0 = arith.constant 0 : index
    %c0_3 = arith.constant 0 : index
    %c0_4 = arith.constant 0 : index
    %c0_5 = arith.constant 0 : index
    %4 = vector.load %arg1[%c0, %c0_3, %c0_4, %c0_5] : memref<1x3x16x16xf32, #tpu.memory_space<vmem>>, vector<1x1x16x13xf32>
    %5 = vector.shape_cast %4 : vector<1x1x16x13xf32> to vector<16x13xf32>
    %c0_6 = arith.constant 0 : index
    %6 = memref.load %arg2[%c0_6] : memref<48xf32, #tpu.memory_space<smem>>
    %7 = vector.broadcast %6 : f32 to vector<16x13xf32>
    %8 = arith.mulf %7, %5 : vector<16x13xf32>
    %9 = arith.addf %0, %8 : vector<16x13xf32>
    %c4 = arith.constant 4 : index
    %10 = memref.load %arg2[%c4] : memref<48xf32, #tpu.memory_space<smem>>
    %11 = vector.broadcast %10 : f32 to vector<16x13xf32>
    %12 = arith.mulf %11, %5 : vector<16x13xf32>
    %13 = arith.addf %1, %12 : vector<16x13xf32>
    %c8 = arith.constant 8 : index
    %14 = memref.load %arg2[%c8] : memref<48xf32, #tpu.memory_space<smem>>
    %15 = vector.broadcast %14 : f32 to vector<16x13xf32>
    %16 = arith.mulf %15, %5 : vector<16x13xf32>
    %17 = arith.addf %2, %16 : vector<16x13xf32>
    %c12 = arith.constant 12 : index
    %18 = memref.load %arg2[%c12] : memref<48xf32, #tpu.memory_space<smem>>
    %19 = vector.broadcast %18 : f32 to vector<16x13xf32>
    %20 = arith.mulf %19, %5 : vector<16x13xf32>
    %21 = arith.addf %3, %20 : vector<16x13xf32>
    %c0_7 = arith.constant 0 : index
    %c1 = arith.constant 1 : index
    %c0_8 = arith.constant 0 : index
    %c0_9 = arith.constant 0 : index
    %22 = vector.load %arg1[%c0_7, %c1, %c0_8, %c0_9] : memref<1x3x16x16xf32, #tpu.memory_space<vmem>>, vector<1x1x16x13xf32>
    %23 = vector.shape_cast %22 : vector<1x1x16x13xf32> to vector<16x13xf32>
    %c16 = arith.constant 16 : index
    %24 = memref.load %arg2[%c16] : memref<48xf32, #tpu.memory_space<smem>>
    %25 = vector.broadcast %24 : f32 to vector<16x13xf32>
    %26 = arith.mulf %25, %23 : vector<16x13xf32>
    %27 = arith.addf %9, %26 : vector<16x13xf32>
    %c20 = arith.constant 20 : index
    %28 = memref.load %arg2[%c20] : memref<48xf32, #tpu.memory_space<smem>>
    %29 = vector.broadcast %28 : f32 to vector<16x13xf32>
    %30 = arith.mulf %29, %23 : vector<16x13xf32>
    %31 = arith.addf %13, %30 : vector<16x13xf32>
    %c24 = arith.constant 24 : index
    %32 = memref.load %arg2[%c24] : memref<48xf32, #tpu.memory_space<smem>>
    %33 = vector.broadcast %32 : f32 to vector<16x13xf32>
    %34 = arith.mulf %33, %23 : vector<16x13xf32>
    %35 = arith.addf %17, %34 : vector<16x13xf32>
    %c28 = arith.constant 28 : index
    %36 = memref.load %arg2[%c28] : memref<48xf32, #tpu.memory_space<smem>>
    %37 = vector.broadcast %36 : f32 to vector<16x13xf32>
    %38 = arith.mulf %37, %23 : vector<16x13xf32>
    %39 = arith.addf %21, %38 : vector<16x13xf32>
    %c0_10 = arith.constant 0 : index
    %c2 = arith.constant 2 : index
    %c0_11 = arith.constant 0 : index
    %c0_12 = arith.constant 0 : index
    %40 = vector.load %arg1[%c0_10, %c2, %c0_11, %c0_12] : memref<1x3x16x16xf32, #tpu.memory_space<vmem>>, vector<1x1x16x13xf32>
    %41 = vector.shape_cast %40 : vector<1x1x16x13xf32> to vector<16x13xf32>
    %c32 = arith.constant 32 : index
    %42 = memref.load %arg2[%c32] : memref<48xf32, #tpu.memory_space<smem>>
    %43 = vector.broadcast %42 : f32 to vector<16x13xf32>
    %44 = arith.mulf %43, %41 : vector<16x13xf32>
    %45 = arith.addf %27, %44 : vector<16x13xf32>
    %c36 = arith.constant 36 : index
    %46 = memref.load %arg2[%c36] : memref<48xf32, #tpu.memory_space<smem>>
    %47 = vector.broadcast %46 : f32 to vector<16x13xf32>
    %48 = arith.mulf %47, %41 : vector<16x13xf32>
    %49 = arith.addf %31, %48 : vector<16x13xf32>
    %c40 = arith.constant 40 : index
    %50 = memref.load %arg2[%c40] : memref<48xf32, #tpu.memory_space<smem>>
    %51 = vector.broadcast %50 : f32 to vector<16x13xf32>
    %52 = arith.mulf %51, %41 : vector<16x13xf32>
    %53 = arith.addf %35, %52 : vector<16x13xf32>
    %c44 = arith.constant 44 : index
    %54 = memref.load %arg2[%c44] : memref<48xf32, #tpu.memory_space<smem>>
    %55 = vector.broadcast %54 : f32 to vector<16x13xf32>
    %56 = arith.mulf %55, %41 : vector<16x13xf32>
    %57 = arith.addf %39, %56 : vector<16x13xf32>
    %c0_13 = arith.constant 0 : index
    %c0_14 = arith.constant 0 : index
    %c0_15 = arith.constant 0 : index
    %c1_16 = arith.constant 1 : index
    %58 = vector.load %arg1[%c0_13, %c0_14, %c0_15, %c1_16] : memref<1x3x16x16xf32, #tpu.memory_space<vmem>>, vector<1x1x16x13xf32>
    %59 = vector.shape_cast %58 : vector<1x1x16x13xf32> to vector<16x13xf32>
    %c1_17 = arith.constant 1 : index
    %60 = memref.load %arg2[%c1_17] : memref<48xf32, #tpu.memory_space<smem>>
    %61 = vector.broadcast %60 : f32 to vector<16x13xf32>
    %62 = arith.mulf %61, %59 : vector<16x13xf32>
    %63 = arith.addf %45, %62 : vector<16x13xf32>
    %c5 = arith.constant 5 : index
    %64 = memref.load %arg2[%c5] : memref<48xf32, #tpu.memory_space<smem>>
    %65 = vector.broadcast %64 : f32 to vector<16x13xf32>
    %66 = arith.mulf %65, %59 : vector<16x13xf32>
    %67 = arith.addf %49, %66 : vector<16x13xf32>
    %c9 = arith.constant 9 : index
    %68 = memref.load %arg2[%c9] : memref<48xf32, #tpu.memory_space<smem>>
    %69 = vector.broadcast %68 : f32 to vector<16x13xf32>
    %70 = arith.mulf %69, %59 : vector<16x13xf32>
    %71 = arith.addf %53, %70 : vector<16x13xf32>
    %c13 = arith.constant 13 : index
    %72 = memref.load %arg2[%c13] : memref<48xf32, #tpu.memory_space<smem>>
    %73 = vector.broadcast %72 : f32 to vector<16x13xf32>
    %74 = arith.mulf %73, %59 : vector<16x13xf32>
    %75 = arith.addf %57, %74 : vector<16x13xf32>
    %c0_18 = arith.constant 0 : index
    %c1_19 = arith.constant 1 : index
    %c0_20 = arith.constant 0 : index
    %c1_21 = arith.constant 1 : index
    %76 = vector.load %arg1[%c0_18, %c1_19, %c0_20, %c1_21] : memref<1x3x16x16xf32, #tpu.memory_space<vmem>>, vector<1x1x16x13xf32>
    %77 = vector.shape_cast %76 : vector<1x1x16x13xf32> to vector<16x13xf32>
    %c17 = arith.constant 17 : index
    %78 = memref.load %arg2[%c17] : memref<48xf32, #tpu.memory_space<smem>>
    %79 = vector.broadcast %78 : f32 to vector<16x13xf32>
    %80 = arith.mulf %79, %77 : vector<16x13xf32>
    %81 = arith.addf %63, %80 : vector<16x13xf32>
    %c21 = arith.constant 21 : index
    %82 = memref.load %arg2[%c21] : memref<48xf32, #tpu.memory_space<smem>>
    %83 = vector.broadcast %82 : f32 to vector<16x13xf32>
    %84 = arith.mulf %83, %77 : vector<16x13xf32>
    %85 = arith.addf %67, %84 : vector<16x13xf32>
    %c25 = arith.constant 25 : index
    %86 = memref.load %arg2[%c25] : memref<48xf32, #tpu.memory_space<smem>>
    %87 = vector.broadcast %86 : f32 to vector<16x13xf32>
    %88 = arith.mulf %87, %77 : vector<16x13xf32>
    %89 = arith.addf %71, %88 : vector<16x13xf32>
    %c29 = arith.constant 29 : index
    %90 = memref.load %arg2[%c29] : memref<48xf32, #tpu.memory_space<smem>>
    %91 = vector.broadcast %90 : f32 to vector<16x13xf32>
    %92 = arith.mulf %91, %77 : vector<16x13xf32>
    %93 = arith.addf %75, %92 : vector<16x13xf32>
    %c0_22 = arith.constant 0 : index
    %c2_23 = arith.constant 2 : index
    %c0_24 = arith.constant 0 : index
    %c1_25 = arith.constant 1 : index
    %94 = vector.load %arg1[%c0_22, %c2_23, %c0_24, %c1_25] : memref<1x3x16x16xf32, #tpu.memory_space<vmem>>, vector<1x1x16x13xf32>
    %95 = vector.shape_cast %94 : vector<1x1x16x13xf32> to vector<16x13xf32>
    %c33 = arith.constant 33 : index
    %96 = memref.load %arg2[%c33] : memref<48xf32, #tpu.memory_space<smem>>
    %97 = vector.broadcast %96 : f32 to vector<16x13xf32>
    %98 = arith.mulf %97, %95 : vector<16x13xf32>
    %99 = arith.addf %81, %98 : vector<16x13xf32>
    %c37 = arith.constant 37 : index
    %100 = memref.load %arg2[%c37] : memref<48xf32, #tpu.memory_space<smem>>
    %101 = vector.broadcast %100 : f32 to vector<16x13xf32>
    %102 = arith.mulf %101, %95 : vector<16x13xf32>
    %103 = arith.addf %85, %102 : vector<16x13xf32>
    %c41 = arith.constant 41 : index
    %104 = memref.load %arg2[%c41] : memref<48xf32, #tpu.memory_space<smem>>
    %105 = vector.broadcast %104 : f32 to vector<16x13xf32>
    %106 = arith.mulf %105, %95 : vector<16x13xf32>
    %107 = arith.addf %89, %106 : vector<16x13xf32>
    %c45 = arith.constant 45 : index
    %108 = memref.load %arg2[%c45] : memref<48xf32, #tpu.memory_space<smem>>
    %109 = vector.broadcast %108 : f32 to vector<16x13xf32>
    %110 = arith.mulf %109, %95 : vector<16x13xf32>
    %111 = arith.addf %93, %110 : vector<16x13xf32>
    %c0_26 = arith.constant 0 : index
    %c0_27 = arith.constant 0 : index
    %c0_28 = arith.constant 0 : index
    %c2_29 = arith.constant 2 : index
    %112 = vector.load %arg1[%c0_26, %c0_27, %c0_28, %c2_29] : memref<1x3x16x16xf32, #tpu.memory_space<vmem>>, vector<1x1x16x13xf32>
    %113 = vector.shape_cast %112 : vector<1x1x16x13xf32> to vector<16x13xf32>
    %c2_30 = arith.constant 2 : index
    %114 = memref.load %arg2[%c2_30] : memref<48xf32, #tpu.memory_space<smem>>
    %115 = vector.broadcast %114 : f32 to vector<16x13xf32>
    %116 = arith.mulf %115, %113 : vector<16x13xf32>
    %117 = arith.addf %99, %116 : vector<16x13xf32>
    %c6 = arith.constant 6 : index
    %118 = memref.load %arg2[%c6] : memref<48xf32, #tpu.memory_space<smem>>
    %119 = vector.broadcast %118 : f32 to vector<16x13xf32>
    %120 = arith.mulf %119, %113 : vector<16x13xf32>
    %121 = arith.addf %103, %120 : vector<16x13xf32>
    %c10 = arith.constant 10 : index
    %122 = memref.load %arg2[%c10] : memref<48xf32, #tpu.memory_space<smem>>
    %123 = vector.broadcast %122 : f32 to vector<16x13xf32>
    %124 = arith.mulf %123, %113 : vector<16x13xf32>
    %125 = arith.addf %107, %124 : vector<16x13xf32>
    %c14 = arith.constant 14 : index
    %126 = memref.load %arg2[%c14] : memref<48xf32, #tpu.memory_space<smem>>
    %127 = vector.broadcast %126 : f32 to vector<16x13xf32>
    %128 = arith.mulf %127, %113 : vector<16x13xf32>
    %129 = arith.addf %111, %128 : vector<16x13xf32>
    %c0_31 = arith.constant 0 : index
    %c1_32 = arith.constant 1 : index
    %c0_33 = arith.constant 0 : index
    %c2_34 = arith.constant 2 : index
    %130 = vector.load %arg1[%c0_31, %c1_32, %c0_33, %c2_34] : memref<1x3x16x16xf32, #tpu.memory_space<vmem>>, vector<1x1x16x13xf32>
    %131 = vector.shape_cast %130 : vector<1x1x16x13xf32> to vector<16x13xf32>
    %c18 = arith.constant 18 : index
    %132 = memref.load %arg2[%c18] : memref<48xf32, #tpu.memory_space<smem>>
    %133 = vector.broadcast %132 : f32 to vector<16x13xf32>
    %134 = arith.mulf %133, %131 : vector<16x13xf32>
    %135 = arith.addf %117, %134 : vector<16x13xf32>
    %c22 = arith.constant 22 : index
    %136 = memref.load %arg2[%c22] : memref<48xf32, #tpu.memory_space<smem>>
    %137 = vector.broadcast %136 : f32 to vector<16x13xf32>
    %138 = arith.mulf %137, %131 : vector<16x13xf32>
    %139 = arith.addf %121, %138 : vector<16x13xf32>
    %c26 = arith.constant 26 : index
    %140 = memref.load %arg2[%c26] : memref<48xf32, #tpu.memory_space<smem>>
    %141 = vector.broadcast %140 : f32 to vector<16x13xf32>
    %142 = arith.mulf %141, %131 : vector<16x13xf32>
    %143 = arith.addf %125, %142 : vector<16x13xf32>
    %c30 = arith.constant 30 : index
    %144 = memref.load %arg2[%c30] : memref<48xf32, #tpu.memory_space<smem>>
    %145 = vector.broadcast %144 : f32 to vector<16x13xf32>
    %146 = arith.mulf %145, %131 : vector<16x13xf32>
    %147 = arith.addf %129, %146 : vector<16x13xf32>
    %c0_35 = arith.constant 0 : index
    %c2_36 = arith.constant 2 : index
    %c0_37 = arith.constant 0 : index
    %c2_38 = arith.constant 2 : index
    %148 = vector.load %arg1[%c0_35, %c2_36, %c0_37, %c2_38] : memref<1x3x16x16xf32, #tpu.memory_space<vmem>>, vector<1x1x16x13xf32>
    %149 = vector.shape_cast %148 : vector<1x1x16x13xf32> to vector<16x13xf32>
    %c34 = arith.constant 34 : index
    %150 = memref.load %arg2[%c34] : memref<48xf32, #tpu.memory_space<smem>>
    %151 = vector.broadcast %150 : f32 to vector<16x13xf32>
    %152 = arith.mulf %151, %149 : vector<16x13xf32>
    %153 = arith.addf %135, %152 : vector<16x13xf32>
    %c38 = arith.constant 38 : index
    %154 = memref.load %arg2[%c38] : memref<48xf32, #tpu.memory_space<smem>>
    %155 = vector.broadcast %154 : f32 to vector<16x13xf32>
    %156 = arith.mulf %155, %149 : vector<16x13xf32>
    %157 = arith.addf %139, %156 : vector<16x13xf32>
    %c42 = arith.constant 42 : index
    %158 = memref.load %arg2[%c42] : memref<48xf32, #tpu.memory_space<smem>>
    %159 = vector.broadcast %158 : f32 to vector<16x13xf32>
    %160 = arith.mulf %159, %149 : vector<16x13xf32>
    %161 = arith.addf %143, %160 : vector<16x13xf32>
    %c46 = arith.constant 46 : index
    %162 = memref.load %arg2[%c46] : memref<48xf32, #tpu.memory_space<smem>>
    %163 = vector.broadcast %162 : f32 to vector<16x13xf32>
    %164 = arith.mulf %163, %149 : vector<16x13xf32>
    %165 = arith.addf %147, %164 : vector<16x13xf32>
    %c0_39 = arith.constant 0 : index
    %c0_40 = arith.constant 0 : index
    %c0_41 = arith.constant 0 : index
    %c3 = arith.constant 3 : index
    %166 = vector.load %arg1[%c0_39, %c0_40, %c0_41, %c3] : memref<1x3x16x16xf32, #tpu.memory_space<vmem>>, vector<1x1x16x13xf32>
    %167 = vector.shape_cast %166 : vector<1x1x16x13xf32> to vector<16x13xf32>
    %c3_42 = arith.constant 3 : index
    %168 = memref.load %arg2[%c3_42] : memref<48xf32, #tpu.memory_space<smem>>
    %169 = vector.broadcast %168 : f32 to vector<16x13xf32>
    %170 = arith.mulf %169, %167 : vector<16x13xf32>
    %171 = arith.addf %153, %170 : vector<16x13xf32>
    %c7 = arith.constant 7 : index
    %172 = memref.load %arg2[%c7] : memref<48xf32, #tpu.memory_space<smem>>
    %173 = vector.broadcast %172 : f32 to vector<16x13xf32>
    %174 = arith.mulf %173, %167 : vector<16x13xf32>
    %175 = arith.addf %157, %174 : vector<16x13xf32>
    %c11 = arith.constant 11 : index
    %176 = memref.load %arg2[%c11] : memref<48xf32, #tpu.memory_space<smem>>
    %177 = vector.broadcast %176 : f32 to vector<16x13xf32>
    %178 = arith.mulf %177, %167 : vector<16x13xf32>
    %179 = arith.addf %161, %178 : vector<16x13xf32>
    %c15 = arith.constant 15 : index
    %180 = memref.load %arg2[%c15] : memref<48xf32, #tpu.memory_space<smem>>
    %181 = vector.broadcast %180 : f32 to vector<16x13xf32>
    %182 = arith.mulf %181, %167 : vector<16x13xf32>
    %183 = arith.addf %165, %182 : vector<16x13xf32>
    %c0_43 = arith.constant 0 : index
    %c1_44 = arith.constant 1 : index
    %c0_45 = arith.constant 0 : index
    %c3_46 = arith.constant 3 : index
    %184 = vector.load %arg1[%c0_43, %c1_44, %c0_45, %c3_46] : memref<1x3x16x16xf32, #tpu.memory_space<vmem>>, vector<1x1x16x13xf32>
    %185 = vector.shape_cast %184 : vector<1x1x16x13xf32> to vector<16x13xf32>
    %c19 = arith.constant 19 : index
    %186 = memref.load %arg2[%c19] : memref<48xf32, #tpu.memory_space<smem>>
    %187 = vector.broadcast %186 : f32 to vector<16x13xf32>
    %188 = arith.mulf %187, %185 : vector<16x13xf32>
    %189 = arith.addf %171, %188 : vector<16x13xf32>
    %c23 = arith.constant 23 : index
    %190 = memref.load %arg2[%c23] : memref<48xf32, #tpu.memory_space<smem>>
    %191 = vector.broadcast %190 : f32 to vector<16x13xf32>
    %192 = arith.mulf %191, %185 : vector<16x13xf32>
    %193 = arith.addf %175, %192 : vector<16x13xf32>
    %c27 = arith.constant 27 : index
    %194 = memref.load %arg2[%c27] : memref<48xf32, #tpu.memory_space<smem>>
    %195 = vector.broadcast %194 : f32 to vector<16x13xf32>
    %196 = arith.mulf %195, %185 : vector<16x13xf32>
    %197 = arith.addf %179, %196 : vector<16x13xf32>
    %c31 = arith.constant 31 : index
    %198 = memref.load %arg2[%c31] : memref<48xf32, #tpu.memory_space<smem>>
    %199 = vector.broadcast %198 : f32 to vector<16x13xf32>
    %200 = arith.mulf %199, %185 : vector<16x13xf32>
    %201 = arith.addf %183, %200 : vector<16x13xf32>
    %c0_47 = arith.constant 0 : index
    %c2_48 = arith.constant 2 : index
    %c0_49 = arith.constant 0 : index
    %c3_50 = arith.constant 3 : index
    %202 = vector.load %arg1[%c0_47, %c2_48, %c0_49, %c3_50] : memref<1x3x16x16xf32, #tpu.memory_space<vmem>>, vector<1x1x16x13xf32>
    %203 = vector.shape_cast %202 : vector<1x1x16x13xf32> to vector<16x13xf32>
    %c35 = arith.constant 35 : index
    %204 = memref.load %arg2[%c35] : memref<48xf32, #tpu.memory_space<smem>>
    %205 = vector.broadcast %204 : f32 to vector<16x13xf32>
    %206 = arith.mulf %205, %203 : vector<16x13xf32>
    %207 = arith.addf %189, %206 : vector<16x13xf32>
    %c39 = arith.constant 39 : index
    %208 = memref.load %arg2[%c39] : memref<48xf32, #tpu.memory_space<smem>>
    %209 = vector.broadcast %208 : f32 to vector<16x13xf32>
    %210 = arith.mulf %209, %203 : vector<16x13xf32>
    %211 = arith.addf %193, %210 : vector<16x13xf32>
    %c43 = arith.constant 43 : index
    %212 = memref.load %arg2[%c43] : memref<48xf32, #tpu.memory_space<smem>>
    %213 = vector.broadcast %212 : f32 to vector<16x13xf32>
    %214 = arith.mulf %213, %203 : vector<16x13xf32>
    %215 = arith.addf %197, %214 : vector<16x13xf32>
    %c47 = arith.constant 47 : index
    %216 = memref.load %arg2[%c47] : memref<48xf32, #tpu.memory_space<smem>>
    %217 = vector.broadcast %216 : f32 to vector<16x13xf32>
    %218 = arith.mulf %217, %203 : vector<16x13xf32>
    %219 = arith.addf %201, %218 : vector<16x13xf32>
    %220 = vector.extract_strided_slice %207 {offsets = [0, 0], sizes = [13, 13], strides = [1, 1]} : vector<16x13xf32> to vector<13x13xf32>
    %221 = vector.extract_strided_slice %211 {offsets = [1, 0], sizes = [13, 13], strides = [1, 1]} : vector<16x13xf32> to vector<13x13xf32>
    %222 = arith.addf %220, %221 : vector<13x13xf32>
    %223 = vector.extract_strided_slice %215 {offsets = [2, 0], sizes = [13, 13], strides = [1, 1]} : vector<16x13xf32> to vector<13x13xf32>
    %224 = arith.addf %222, %223 : vector<13x13xf32>
    %225 = vector.extract_strided_slice %219 {offsets = [3, 0], sizes = [13, 13], strides = [1, 1]} : vector<16x13xf32> to vector<13x13xf32>
    %226 = arith.addf %224, %225 : vector<13x13xf32>
    %cst_51 = arith.constant 0.000000e+00 : f32
    %227 = vector.broadcast %cst_51 : f32 to vector<3x13xf32>
    %228 = tpu.concatenate %226, %227 in 0 : vector<13x13xf32>, vector<3x13xf32> -> vector<16x13xf32>
    %229 = arith.negf %228 : vector<16x13xf32>
    %230 = math.exp %229 : vector<16x13xf32>
    %cst_52 = arith.constant 1.000000e+00 : f32
    %231 = vector.broadcast %cst_52 : f32 to vector<16x13xf32>
    %232 = arith.addf %231, %230 : vector<16x13xf32>
    %233 = arith.divf %231, %232 : vector<16x13xf32>
    %c0_53 = arith.constant 0 : index
    %c0_54 = arith.constant 0 : index
    %c0_55 = arith.constant 0 : index
    %234 = vector.load %arg3[%c0_53, %c0_54, %c0_55] : memref<1x16x13xf32, #tpu.memory_space<vmem>>, vector<1x16x13xf32>
    %235 = vector.shape_cast %234 : vector<1x16x13xf32> to vector<16x13xf32>
    %236 = vector.shape_cast %233 : vector<16x13xf32> to vector<1x16x13xf32>
    tpu.vector_store %arg3[%c0_53, %c0_54, %c0_55], %236 {strides = array<i32>} : memref<1x16x13xf32, #tpu.memory_space<vmem>>, vector<1x16x13xf32>,
    return
  }
  func.func @transform_0(%arg0: i32) -> (i32, i32, i32, i32) {
    %c0_i32 = arith.constant 0 : i32
    %c0_i32_0 = arith.constant 0 : i32
    %c0_i32_1 = arith.constant 0 : i32
    %c0_i32_2 = arith.constant 0 : i32
    return %arg0, %c0_i32, %c0_i32_0, %c0_i32_1 : i32, i32, i32, i32
  }
  func.func @transform_1(%arg0: i32) -> i32 {
    %c0_i32 = arith.constant 0 : i32
    %c0_i32_0 = arith.constant 0 : i32
    return %c0_i32 : i32
  }
  func.func @transform_2(%arg0: i32) -> (i32, i32, i32) {
    %c0_i32 = arith.constant 0 : i32
    %c0_i32_0 = arith.constant 0 : i32
    %c0_i32_1 = arith.constant 0 : i32
    return %arg0, %c0_i32, %c0_i32_0 : i32, i32, i32
  }
}

</mosaic_0001>

<bundles_post_ra>
// kernel: tpu_custom_call.1
= control target key start
LH: loop header
LB: loop body
LE: loop exit
PB: predicated region body
PF: predicated region fallthrough
CT: control target
= control target key end

     0   :  { %7 = vsyncpa [#allocation3], 0  ;;  %s1524_s0 = inlined_call_operand.hbm [shape: f32[2,3,16,16], index: 0, kind: input, shape index: {}]   ;;  %s1525_s1 = inlined_call_operand.vmem [shape: f32[48], index: 1, kind: input, shape index: {}]   ;;  %s1526_s2 = inlined_call_operand.vmem [shape: f32[2,16,13], index: 2, kind: output, shape index: {}]  }
   0x1   :  { %9 = vsyncpa [#allocation3 + $0x1], 0 }
   0x2   :  { %10 = vsyncpa [#allocation4], 0  ;;  %s1123_s9 = smov 0   ;;  %s1125_s10 = smov 0  }
   0x3   :  { %s1127_s11 = smov 0   ;;  %s1129_s12 = smov 0  }
   0x4 LB: > { %s1142_s13 = sadd.s32 4294967295, %s1099_s12   ;;  %s1145_s14 = sadd.s32 1, %s1099_s12   ;;  %s1099_s12 = sphi %s1129_s12, %s1541_s12   ;;  %s1095_s11 = sphi %s1127_s11, %s1540_s11   ;;  %s1091_s10 = sphi %s1125_s10, %s1539_s10   ;;  %s1087_s9 = sphi %s1123_s9, %s1538_s9  }
   0x5   : > { %s20_s15 = ssub.s32 %s1099_s12, %s1145_s14  ;;  %s23_s16 = sadd.s32 1, %s1095_s11 }
   0x6   : > { %p21_p0 = scmp.eq.s32.totalorder %s20_s15, 0  ;;  %p30_p1 = scmp.ne.s32.totalorder %s1095_s11, %s1091_s10 }
   0x7   : > { %p31_p2 = scmp.eq.s32.totalorder %s1099_s12, 0  ;;  %p36_p3 = scmp.ne.s32.totalorder %s1091_s10, %s1087_s9 }
   0x8   : > { %s1155_s17 = scalar_select %p21_p0, %s1095_s11, %s23_s16  }
   0x9   : > { %p32_p4 = por %p31_p2, %p30_p1  ;;  %p1528_p5 = scmp.eq.s32.totalorder %s1142_s13, 0 }
   0xa   : > { %p888_p6 = scmp.ge.s32.totalorder %s1099_s12, 1  ;;  %p94_p7 = scmp.lt.s32.totalorder %s1099_s12, 3 }
   0xb   : > { %p1162_p8 = por %p1528_p5, %p36_p3  ;;  %s107_s22 = sshll.u32 %s1525_s1, 4  ;;  %s108_s22 = int_to_ptr.vmem [resolvable:$true] %s107_s22 }
   0xc   : > { %p1166_p9 = pnand %p888_p6, %p94_p7  ;;  %p970_p11 = scmp.lt.s32.totalorder %s1099_s12, 2 }
   0xd   : > { %s1530_s18 = scalar_select %p1162_p8, 1, 0 }
   0xe   : > { %s1531_s19 = scalar_select %p1166_p9, 1, 0 }
   0xf   : > { %p961_p10 = pneg %p1166_p9  ;;  %s118_s23 = sand.u32 1, %s1095_s11  }
  0x10   : > { %p1183_p13 = pnand %p970_p11, %p32_p4  ;;  %s952_s26 = smul.u32 48, %s118_s23 }
  0x11   : > { %p1179_p12 = pnand %p961_p10, %p1528_p5  ;;  %s953_s27 = smul.u32 768, %s1099_s12 }
  0x12   : > { %s1018_s28 = scalar_lea.vmem %s108_s22, 16  ;;  %p1026_p6 = scmp.lt.s32.totalorder %s108_s22, %s108_s22 }
  0x13   : > { %p1019_p0 = scmp.ne.s32.totalorder %s108_s22, %s1018_s28  ;;  %p1020_p1 = pneg %p1179_p12 }
  0x14   : > { %p1027_p7 = scmp.lt.s32.totalorder %s1018_s28, %s1018_s28 }
  0x15   : > { %p1021_p2 = pnand %p1020_p1, %p1019_p0 }
  0x16   : > { %p1028_p8 = por %p1027_p7, %p1026_p6 }
  0x17   : > { %p1022_p3 = pneg %p1021_p2 }
  0x19   : > { %p1029_p10 = pnand %p1028_p8, %p1022_p3 }
  0x1b   : > { %1032 = shalt.err (!%p1029_p10)
}
  0x1c   : > { %s1101_s29 = smov [#allocation5]   ;;  %s1195_s4 = scalar_lea.hbm %s1524_s0, %s953_s27 }
  0x1d   : > { %964 = dma.vmem_to_smem (!%p1179_p12), %s108_s22, 16, %s1101_s29, [#allocation4]  }
  0x1e   : > { %s122_s5 = scalar_lea.vmem [#allocation2], %s952_s26  ;;  %s1199_s7 = scalar_lea.sflag [#allocation3], %s118_s23 }
  0x1f   : > { %s129_s6 = sshll.u32 %s122_s5, 4  ;;  %s1033_s8 = scalar_lea.hbm %s1195_s4, 768  ;;  %s1197_s6 = int_to_ptr.vmem [resolvable:$true] %s129_s6 }
  0x20   : > { %p1034_p4 = scmp.ne.s32.totalorder %s1195_s4, %s1033_s8  ;;  %p1035_p8 = pneg %p1183_p13 }
  0x21   : > { %s1038_s15 = scalar_lea.hbm %s1524_s0, 1536  ;;  %p1039_p0 = scmp.lt.s32.totalorder %s1195_s4, %s1524_s0 }
  0x22   : > { %p1036_p11 = pnand %p1035_p8, %p1034_p4  ;;  %p1040_p1 = scmp.lt.s32.totalorder %s1038_s15, %s1033_s8 }
  0x24   : > { %p1037_p12 = pneg %p1036_p11  ;;  %p1041_p2 = por %p1040_p1, %p1039_p0 }
  0x26   : > { %p1042_p3 = pnand %p1041_p2, %p1037_p12 }
  0x28   : > { %1045 = shalt.err (!%p1042_p3)
}
  0x29   : > { %s1046_s21 = scalar_lea.vmem %s1197_s6, 768  ;;  %s1102_s22 = smov [#allocation2]  }
  0x2a   : > { %p1047_p6 = scmp.ne.s32.totalorder %s1197_s6, %s1046_s21  ;;  %s1051_s23 = sshll.u32 %s1102_s22, 4  ;;  %s1052_s23 = int_to_ptr.vmem [resolvable:$false] %s1051_s23 }
  0x2b   : > { %s1053_s24 = scalar_lea.vmem %s1052_s23, 1536  ;;  %p1054_p4 = scmp.lt.s32.totalorder %s1197_s6, %s1052_s23 }
  0x2c   : > { %p1049_p7 = pnand %p1047_p6, %p1035_p8  ;;  %p1055_p11 = scmp.lt.s32.totalorder %s1053_s24, %s1046_s21 }
  0x2e   : > { %p1050_p10 = pneg %p1049_p7  ;;  %p1056_p5 = por %p1055_p11, %p1054_p4 }
  0x30   : > { %p1057_p9 = pnand %p1056_p5, %p1050_p10 }
  0x32   : > { %1060 = shalt.err (!%p1057_p9)
}
  0x33   : > { %s1103_s26 = smov 128   ;;  %s1104_s27 = smov 8  }
  0x34   : > { %968 = dma.hbm_to_vmem [thread:$0]  (!%p1183_p13), %s1195_s4, 768, %s1197_s6, %s1199_s7, %s1103_s26, %s1103_s26, %s1104_s27  }
  0x35   : > { %p1534_p8 = scmp.ne.s32.totalorder %s1531_s19, 0 }
  0x36   : > { %s143_s28 = sand.u32 (!%p1534_p8), 1, %s1091_s10   ;;  %p1535_p5 = scmp.ne.s32.totalorder (!%p1534_p8), %s1530_s18, 0 }
  0x37   : > { %141 = sbr.rel (%p1534_p8) target bundleno = 372 (0x174), region = 28  ;;  %s144_s30 = scalar_lea.sflag (!%p1534_p8), [#allocation3], %s143_s28 }
  0x38   : > { %s954_s29 = smul.u32 (!%p1534_p8), 48, %s143_s28 }
  0x3a   : > { %s1223_s3 = scalar_lea.vmem (!%p1534_p8), [#allocation2], %s954_s29 }
  0x3c   : > { %1078 = dma.done.wait (%p1535_p5), %s144_s30, 768  }
  0x3d   : > { %1080 = vsyncadd (%p1535_p5), %s144_s30, 4294966528  ;;  %p1536_p9 = scmp.eq.s32.totalorder %s1142_s13, 0 }
  0x3f   : > { %1082 = dma.done.wait (%p1536_p9), [#allocation4], 16   ;;  %p1537_p13 = pmov %p1536_p9 }
  0x41   : > { %1084 = vsyncadd (%p1537_p13), [#allocation4], 4294967280 }
  0x42   : > { %156 = sfence }
  0x43   : > { %s912_s19 = sld [smem:[#allocation5 + $0x5]]  ;;  %v1234_v0 = vld [vmem:[%s1223_s3] sm:$0xff]  ;;  %v1237_v1 = vld [vmem:[%s1223_s3 + $0x8] sm:$0xff]  ;;  %s1105_s18 = smov 127   ;;  %v1254_v14 = vld [vmem:[%s1223_s3 + $0x18] sm:$0xff]  ;;  %vm764_vm0 = vcmask 1046528  }
  0x44   : > { %s911_s25 = sld [smem:[#allocation5 + $0x1]]  ;;  %v1257_v16 = vld [vmem:[%s1223_s3 + $0x10] sm:$0xff]  ;;  %v1280_v26 = vld [vmem:[%s1223_s3 + $0x28] sm:$0xff]  ;;  %v1288_v29 = vld [vmem:[%s1223_s3 + $0x20] sm:$0xff]  ;;  %vm774_vm1 = vcmask 1045504   ;;  %vm784_vm2 = vcmask 1044480  }
  0x45   : > { %s913_s4 = sld [smem:[#allocation5 + $0x9]]  ;;  %p173_p12 = scmp.lt.s32.totalorder %s1142_s13, 1  ;;  %vm805_vm3 = vcmask 105472  }
  0x46   : > { %s914_s5 = sld [smem:[#allocation5 + $0xd]] }
  0x47   : > { %s915_s6 = sld [smem:[#allocation5 + $0x11]]  ;;  %s1543_s13 = smov (!%p173_p12, %s1142_s13), 1 }
  0x48   : > { %s916_s7 = sld [smem:[#allocation5 + $0x15]] }
  0x49   : > { %v273_v2 = vstv %s912_s19  ;;  %s917_s8 = sld [smem:[#allocation5 + $0x19]] }
  0x4a   : > { %v274_v3 = vmul.f32 %v273_v2, %v1234_v0  ;;  %v259_v4 = vstv %s911_s25  ;;  %v275_v6 = vmul.f32 %v273_v2, %v1237_v1  ;;  %s918_s9 = sld [smem:[#allocation5 + $0x1d]] }
  0x4b   : > { %v260_v5 = vmul.f32 %v259_v4, %v1234_v0  ;;  %v261_v7 = vmul.f32 %v259_v4, %v1237_v1  ;;  %v287_v8 = vstv %s913_s4  ;;  %s1263_s12 = sld [smem:[#allocation5 + $0x25]] }
  0x4c   : > { %278 = vrot.lane.b32.xlu1 %v274_v3, %s1105_s18  ;;  %v289_v9 = vmul.f32 %v287_v8, %v1237_v1  ;;  %v288_v10 = vmul.f32 %v287_v8, %v1234_v0  ;;  %v301_v11 = vstv %s914_s5  ;;  %s1269_s15 = sld [smem:[#allocation5 + $0x29]] }
  0x4d   : > { %264 = vrot.lane.b32.xlu0 %v260_v5, %s1105_s18  ;;  %v303_v12 = vmul.f32 %v301_v11, %v1237_v1  ;;  %v302_v13 = vmul.f32 %v301_v11, %v1234_v0  ;;  %v315_v15 = vstv %s915_s6  ;;  %s1271_s16 = sld [smem:[#allocation5 + $0x21]] }
  0x4e   : > { %v317_v17 = vmul.f32 %v1254_v14, %v315_v15  ;;  %v316_v18 = vmul.f32 %v1257_v16, %v315_v15  ;;  %v329_v19 = vstv %s916_s7  ;;  %s1273_s20 = sld [smem:[#allocation5 + $0x6]]  ;;  %s1106_s7 = smov 126  }
  0x4f   : > { %v331_v20 = vmul.f32 %v1254_v14, %v329_v19  ;;  %v330_v21 = vmul.f32 %v1257_v16, %v329_v19  ;;  %v343_v22 = vstv %s917_s8  ;;  %s896_s21 = sld [smem:[#allocation5 + $0x4]] }
  0x50   : > { %280 = vrot.lane.b32.xlu1 %v275_v6, %s1105_s18  ;;  %v345_v23 = vmul.f32 %v1254_v14, %v343_v22  ;;  %v344_v24 = vmul.f32 %v1257_v16, %v343_v22  ;;  %v357_v25 = vstv %s918_s9  ;;  %s902_s22 = sld [smem:[#allocation5 + $0x14]] }
  0x51   : > { %266 = vrot.lane.b32.xlu0 %v261_v7, %s1105_s18  ;;  %s908_s23 = sld [smem:[#allocation5 + $0x24]]  ;;  %v385_v27 = vstv %s1263_s12  ;;  %v359_v28 = vmul.f32 %v1254_v14, %v357_v25  ;;  %v358_v30 = vmul.f32 %v1257_v16, %v357_v25 }
  0x52   : > { %s1283_s24 = sld [smem:[#allocation5]]  ;;  %v399_v31 = vstv %s1269_s15  ;;  %v387_v32 = vmul.f32 %v1280_v26, %v385_v27  ;;  %v386_v34 = vmul.f32 %v1288_v29, %v385_v27 }
  0x53   : > { %s1290_s26 = sld [smem:[#allocation5 + $0x10]]  ;;  %v400_v38 = vmul.f32 %v1288_v29, %v399_v31  ;;  %v371_v42 = vstv %s1271_s16  ;;  %v401_v61 = vmul.f32 %v1280_v26, %v399_v31 }
  0x54   : > { %294 = vrot.lane.b32.xlu1 %v289_v9, %s1105_s18  ;;  %s1295_s27 = sld [smem:[#allocation5 + $0x20]]  ;;  %v441_v54 = vstv %s1273_s20  ;;  %v373_v58 = vmul.f32 %v1280_v26, %v371_v42  ;;  %v372_v2 = vmul.f32 %v1288_v29, %v371_v42 }
  0x55   : > { %292 = vrot.lane.b32.xlu0 %v288_v10, %s1105_s18  ;;  %v187_v33 = vstv %s896_s21  ;;  %s1303_s28 = sld [smem:[#allocation5 + $0x2d]]  ;;  %v442_v63 = vmul.f32 %v441_v54, %v1234_v0  ;;  %v443_v9 = vmul.f32 %v441_v54, %v1237_v1 }
  0x56   : > { %v214_v35 = vstv %s902_s22  ;;  %v188_v36 = vmul.f32 %v187_v33, %v1234_v0  ;;  %v189_v37 = vmul.f32 %v187_v33, %v1237_v1  ;;  %s1312_s29 = sld [smem:[#allocation5 + $0x8]] }
  0x57   : > { %v215_v39 = vmul.f32 %v1257_v16, %v214_v35  ;;  %v241_v40 = vstv %s908_s23  ;;  %v216_v41 = vmul.f32 %v1254_v14, %v214_v35  ;;  %s1316_s30 = sld [smem:[#allocation5 + $0x18]] }
  0x58   : > { %308 = vrot.lane.b32.xlu1 %v303_v12, %s1105_s18  ;;  %v242_v43 = vmul.f32 %v1288_v29, %v241_v40  ;;  %v181_v44 = vstv %s1283_s24  ;;  %v243_v45 = vmul.f32 %v1280_v26, %v241_v40  ;;  %s1322_s3 = sld [smem:[#allocation5 + $0x28]] }
  0x59   : > { %306 = vrot.lane.b32.xlu0 %v302_v13, %s1105_s18  ;;  %v217_v46 = vadd.f32 %v215_v39, %v188_v36  ;;  %v208_v47 = vstv %s1290_s26  ;;  %v182_v48 = vmul.f32 %v181_v44, %v1234_v0  ;;  %v218_v49 = vadd.f32 %v216_v41, %v189_v37  ;;  %s1331_s19 = sld [smem:[#allocation5 + $0xc]] }
  0x5a   : > { %v209_v50 = vmul.f32 %v1257_v16, %v208_v47  ;;  %v235_v51 = vstv %s1295_s27  ;;  %v183_v52 = vmul.f32 %v181_v44, %v1237_v1  ;;  %v210_v53 = vmul.f32 %v1254_v14, %v208_v47  ;;  %s1335_s25 = sld [smem:[#allocation5 + $0x1c]]  ;;  %s1107_s27 = smov 125  }
  0x5b   : > { %v1326_v55 = vadd.f32 %v242_v43, %v217_v46  ;;  %v236_v56 = vmul.f32 %v1288_v29, %v235_v51  ;;  %v1329_v57 = vadd.f32 %v243_v45, %v218_v49  ;;  %v237_v62 = vmul.f32 %v1280_v26, %v235_v51  ;;  %s1339_s4 = sld [smem:[#allocation5 + $0x2c]] }
  0x5c   : > { %322 = vrot.lane.b32.xlu1 %v317_v17, %s1105_s18  ;;  %v211_v59 = vadd.f32 %v209_v50, %v182_v48  ;;  %v212_v60 = vadd.f32 %v210_v53, %v183_v52  ;;  %v193_v4 = vstv %s1312_s29  ;;  %s1354_s5 = sld [smem:[#allocation5 + $0xa]]  ;;  %v413_v13 = vstv %s1303_s28 }
  0x5d   : > { %320 = vrot.lane.b32.xlu0 %v316_v18, %s1105_s18  ;;  %v195_v6 = vmul.f32 %v193_v4, %v1237_v1  ;;  %v220_v7 = vstv %s1316_s30  ;;  %v194_v8 = vmul.f32 %v193_v4, %v1234_v0  ;;  %s1360_s6 = sld [smem:[#allocation5 + $0x2]]  ;;  %v415_v35 = vmul.f32 %v1280_v26, %v413_v13 }
  0x5e   : > { %v1343_v3 = vadd.f32 %v236_v56, %v211_v59  ;;  %v1347_v5 = vadd.f32 %v237_v62, %v212_v60  ;;  %v222_v10 = vmul.f32 %v1254_v14, %v220_v7  ;;  %v247_v11 = vstv %s1322_s3  ;;  %s1373_s8 = sld [smem:[#allocation5 + $0x16]] }
  0x5f   : > { %v221_v12 = vmul.f32 %v1257_v16, %v220_v7  ;;  %v249_v15 = vmul.f32 %v1280_v26, %v247_v11  ;;  %v248_v17 = vmul.f32 %v1288_v29, %v247_v11  ;;  %v199_v18 = vstv %s1331_s19  ;;  %s926_s9 = sld [smem:[#allocation5 + $0xe]] }
  0x60   : > { %336 = vrot.lane.b32.xlu1 %v331_v20, %s1105_s18  ;;  %v224_v19 = vadd.f32 %v222_v10, %v195_v6  ;;  %v226_v22 = vstv %s1335_s25  ;;  %v200_v27 = vmul.f32 %v199_v18, %v1234_v0  ;;  %s929_s12 = sld [smem:[#allocation5 + $0x1a]] }
  0x61   : > { %334 = vrot.lane.b32.xlu0 %v330_v21, %s1105_s18  ;;  %v223_v20 = vadd.f32 %v221_v12, %v194_v8  ;;  %v201_v21 = vmul.f32 %v199_v18, %v1237_v1  ;;  %v227_v25 = vmul.f32 %v1257_v16, %v226_v22  ;;  %s927_s15 = sld [smem:[#allocation5 + $0x12]] }
  0x62   : > { %v455_v39 = vstv %s1354_s5  ;;  %s930_s16 = sld [smem:[#allocation5 + $0x1e]] }
  0x63   : > { %v427_v40 = vstv %s1360_s6  ;;  %v456_v41 = vmul.f32 %v455_v39, %v1234_v0  ;;  %v457_v45 = vmul.f32 %v455_v39, %v1237_v1  ;;  %s933_s20 = sld [smem:[#allocation5 + $0x2a]] }
  0x64   : > { %350 = vrot.lane.b32.xlu1 %v345_v23, %s1105_s18  ;;  %v228_v23 = vmul.f32 %v1254_v14, %v226_v22  ;;  %v429_v42 = vmul.f32 %v427_v40, %v1237_v1  ;;  %v497_v43 = vstv %s1373_s8  ;;  %v428_v46 = vmul.f32 %v427_v40, %v1234_v0  ;;  %s931_s21 = sld [smem:[#allocation5 + $0x22]] }
  0x65   : > { %348 = vrot.lane.b32.xlu0 %v344_v24, %s1105_s18  ;;  %v253_v24 = vstv %s1339_s4  ;;  %v498_v44 = vmul.f32 %v1257_v16, %v497_v43  ;;  %v499_v47 = vmul.f32 %v1254_v14, %v497_v43  ;;  %v469_v48 = vstv %s926_s9  ;;  %s936_s22 = sld [smem:[#allocation5 + $0x7]] }
  0x66   : > { %v255_v31 = vmul.f32 %v1280_v26, %v253_v24  ;;  %v230_v33 = vadd.f32 %v228_v23, %v201_v21  ;;  %v471_v49 = vmul.f32 %v469_v48, %v1237_v1  ;;  %v470_v50 = vmul.f32 %v469_v48, %v1234_v0  ;;  %s934_s23 = sld [smem:[#allocation5 + $0x2e]] }
  0x67   : > { %v511_v51 = vstv %s929_s12  ;;  %v483_v52 = vstv %s927_s15  ;;  %s937_s24 = sld [smem:[#allocation5 + $0xb]] }
  0x68   : > { %364 = vrot.lane.b32.xlu1 %v359_v28, %s1105_s18  ;;  %v1375_v28 = vadd.f32 %v249_v15, %v224_v19  ;;  %v1383_v36 = vadd.f32 %v255_v31, %v230_v33  ;;  %v512_v53 = vmul.f32 %v1257_v16, %v511_v51  ;;  %v485_v54 = vmul.f32 %v1254_v14, %v483_v52  ;;  %s935_s26 = sld [smem:[#allocation5 + $0x3]] }
  0x69   : > { %362 = vrot.lane.b32.xlu0 %v358_v30, %s1105_s18  ;;  %v1377_v30 = vadd.f32 %v248_v17, %v223_v20  ;;  %v513_v59 = vmul.f32 %v1254_v14, %v511_v51  ;;  %v484_v60 = vmul.f32 %v1257_v16, %v483_v52  ;;  %v525_v62 = vstv %s930_s16  ;;  %s940_s28 = sld [smem:[#allocation5 + $0x17]] }
  0x6a   : > { %v567_v4 = vstv %s933_s20  ;;  %v539_v6 = vstv %s931_s21  ;;  %s938_s29 = sld [smem:[#allocation5 + $0xf]] }
  0x6b   : > { %v568_v7 = vmul.f32 %v1288_v29, %v567_v4  ;;  %v541_v8 = vmul.f32 %v1280_v26, %v539_v6  ;;  %v569_v11 = vmul.f32 %v1280_v26, %v567_v4  ;;  %v540_v12 = vmul.f32 %v1288_v29, %v539_v6  ;;  %s941_s30 = sld [smem:[#allocation5 + $0x1b]] }
  0x6c   : > { %392 = vrot.lane.b32.xlu1 %v387_v32, %s1105_s18  ;;  %v254_v32 = vmul.f32 %v1288_v29, %v253_v24  ;;  %v581_v15 = vstv %s934_s23  ;;  %s1448_s3 = sld [smem:[#allocation5 + $0x13]] }
  0x6d   : > { %390 = vrot.lane.b32.xlu0 %v386_v34, %s1105_s18  ;;  %v229_v34 = vadd.f32 %v227_v25, %v200_v27  ;;  %v583_v17 = vmul.f32 %v1280_v26, %v581_v15  ;;  %v582_v18 = vmul.f32 %v1288_v29, %v581_v15  ;;  %v623_v19 = vstv %s937_s24  ;;  %s1454_s19 = sld [smem:[#allocation5 + $0x27]] }
  0x6e   : > { %v595_v20 = vstv %s935_s26  ;;  %v624_v21 = vmul.f32 %v623_v19, %v1234_v0  ;;  %v625_v25 = vmul.f32 %v623_v19, %v1237_v1  ;;  %s942_s25 = sld [smem:[#allocation5 + $0x1f]] }
  0x6f   : > { %v1385_v37 = vadd.f32 %v254_v32, %v229_v34  ;;  %v597_v22 = vmul.f32 %v595_v20, %v1237_v1  ;;  %v665_v23 = vstv %s940_s28  ;;  %v596_v27 = vmul.f32 %v595_v20, %v1234_v0  ;;  %s1472_s4 = sld [smem:[#allocation5 + $0x2b]] }
  0x70   : > { %404 = vrot.lane.b32.xlu1 %v400_v38, %s1105_s18  ;;  %v414_v38 = vmul.f32 %v1288_v29, %v413_v13  ;;  %v666_v24 = vmul.f32 %v1257_v16, %v665_v23  ;;  %v667_v31 = vmul.f32 %v1254_v14, %v665_v23  ;;  %v637_v32 = vstv %s938_s29  ;;  %s1474_s5 = sld [smem:[#allocation5 + $0x23]] }
  0x71   : > { %378 = vrot.lane.b32.xlu0 %v373_v58, %s1105_s18  ;;  %v639_v33 = vmul.f32 %v637_v32, %v1237_v1  ;;  %v638_v34 = vmul.f32 %v637_v32, %v1234_v0  ;;  %s946_s6 = sld [smem:[#allocation5 + $0x2f]] }
  0x74   : > { %446 = vrot.lane.b32.xlu1 %v442_v63, %s1106_s7  ;;  %v527_v63 = vmul.f32 %v1254_v14, %v525_v62 }
  0x75   : > { %406 = vrot.lane.b32.xlu0 %v401_v61, %s1105_s18 }
  0x78   : > { %376 = vrot.lane.b32.xlu1 %v372_v2, %s1105_s18  ;;  %v526_v2 = vmul.f32 %v1257_v16, %v525_v62 }
  0x79   : > { %448 = vrot.lane.b32.xlu0 %v443_v9, %s1106_s7  ;;  %v609_v9 = vstv %s936_s22 }
  0x7a   : > { %v610_v10 = vmul.f32 %v609_v9, %v1234_v0  ;;  %v611_v13 = vmul.f32 %v609_v9, %v1237_v1 }
  0x7c   : > { %420 = vrot.lane.b32.xlu1 %v415_v35, %s1105_s18  ;;  %v679_v35 = vstv %s941_s30 }
  0x7d   : > { %418 = vrot.lane.b32.xlu0 %v414_v38, %s1105_s18  ;;  %s932_s18 = sld [smem:[#allocation5 + $0x26]]  ;;  %v651_v38 = vstv %s1448_s3  ;;  %v680_v39 = vmul.f32 %v1257_v16, %v679_v35 }
  0x7e   : > { %v653_v40 = vmul.f32 %v1254_v14, %v651_v38 }
  0x80   : > { %460 = vrot.lane.b32.xlu1 %v456_v41, %s1106_s7  ;;  %v721_v41 = vstv %s1454_s19 }
  0x81   : > { %434 = vrot.lane.b32.xlu0 %v429_v42, %s1106_s7  ;;  %v722_v0 = vmul.f32 %v1288_v29, %v721_v41 }
  0x83   : > { %v553_v56 = vstv %s932_s18 }
  0x84   : > { %502 = vrot.lane.b32.xlu1 %v498_v44, %s1106_s7  ;;  %v554_v58 = vmul.f32 %v1288_v29, %v553_v56  ;;  %v555_v61 = vmul.f32 %v1280_v26, %v553_v56  ;;  %v735_v56 = vstv %s1472_s4 }
  0x85   : > { %462 = vrot.lane.b32.xlu0 %v457_v45, %s1106_s7  ;;  %v681_v45 = vmul.f32 %v1254_v14, %v679_v35 }
  0x88   : > { %432 = vrot.lane.b32.xlu1 %v428_v46, %s1106_s7 }
  0x89   : > { %504 = vrot.lane.b32.xlu0 %v499_v47, %s1106_s7 }
  0x8c   : > { %476 = vrot.lane.b32.xlu1 %v471_v49, %s1106_s7  ;;  %v723_v49 = vmul.f32 %v1280_v26, %v721_v41 }
  0x8d   : > { %474 = vrot.lane.b32.xlu0 %v470_v50, %s1106_s7  ;;  %v693_v50 = vstv %s942_s25 }
  0x90   : > { %516 = vrot.lane.b32.xlu1 %v512_v53, %s1106_s7 }
  0x91   : > { %490 = vrot.lane.b32.xlu0 %v485_v54, %s1106_s7  ;;  %v694_v54 = vmul.f32 %v1257_v16, %v693_v50 }
  0x94   : > { %558 = vrot.lane.b32.xlu1 %v554_v58, %s1106_s7 }
  0x95   : > { %518 = vrot.lane.b32.xlu0 %v513_v59, %s1106_s7  ;;  %v707_v59 = vstv %s1474_s5 }
  0x96   : > { %v708_v4 = vmul.f32 %v1288_v29, %v707_v59 }
  0x98   : > { %488 = vrot.lane.b32.xlu1 %v484_v60, %s1106_s7 }
  0x99   : > { %560 = vrot.lane.b32.xlu0 %v555_v61, %s1106_s7 }
  0x9c   : > { %532 = vrot.lane.b32.xlu1 %v527_v63, %s1106_s7 }
  0x9d   : > { %530 = vrot.lane.b32.xlu0 %v526_v2, %s1106_s7 }
  0xa0   : > { %572 = vrot.lane.b32.xlu1 %v568_v7, %s1106_s7 }
  0xa1   : > { %546 = vrot.lane.b32.xlu0 %v541_v8, %s1106_s7 }
  0xa4   : > { %614 = vrot.lane.b32.xlu1 %v610_v10, %s1107_s27 }
  0xa5   : > { %574 = vrot.lane.b32.xlu0 %v569_v11, %s1106_s7 }
  0xa8   : > { %544 = vrot.lane.b32.xlu1 %v540_v12, %s1106_s7 }
  0xa9   : > { %616 = vrot.lane.b32.xlu0 %v611_v13, %s1107_s27 }
  0xac   : > { %588 = vrot.lane.b32.xlu1 %v583_v17, %s1106_s7 }
  0xad   : > { %586 = vrot.lane.b32.xlu0 %v582_v18, %s1106_s7  ;;  %s951_s7 = sshll.u32 %s1543_s13, 4 }
  0xae   : > { %s177_s12 = scalar_lea.vmem %s1526_s2, %s951_s7 }
  0xb0   : > { %628 = vrot.lane.b32.xlu1 %v624_v21, %s1107_s27 }
  0xb1   : > { %602 = vrot.lane.b32.xlu0 %v597_v22, %s1107_s27 }
  0xb4   : > { %670 = vrot.lane.b32.xlu1 %v666_v24, %s1107_s27 }
  0xb5   : > { %630 = vrot.lane.b32.xlu0 %v625_v25, %s1107_s27 }
  0xb8   : > { %600 = vrot.lane.b32.xlu1 %v596_v27, %s1107_s27 }
  0xb9   : > { %672 = vrot.lane.b32.xlu0 %v667_v31, %s1107_s27 }
  0xbc   : > { %644 = vrot.lane.b32.xlu1 %v639_v33, %s1107_s27 }
  0xbd   : > { %642 = vrot.lane.b32.xlu0 %v638_v34, %s1107_s27 }
  0xbe   : > { %v279_v42 = vpop.permute.xlu1 %278 }
  0xbf   : > { %v284_v43 = vadd.f32 %v279_v42, %v1326_v55  ;;  %v265_v1 = vpop.permute.xlu0 %264 }
  0xc0   : > { %v270_v44 = vadd.f32 %v265_v1, %v1343_v3  ;;  %684 = vrot.lane.b32.xlu1 %v680_v39, %s1107_s27  ;;  %v652_v3 = vmul.f32 %v1257_v16, %v651_v38 }
  0xc1   : > { %658 = vrot.lane.b32.xlu0 %v653_v40, %s1107_s27 }
  0xc2   : > { %v281_v46 = vpop.permute.xlu1 %280 }
  0xc3   : > { %v285_v47 = vadd.f32 %v281_v46, %v1329_v57  ;;  %v267_v55 = vpop.permute.xlu0 %266 }
  0xc4   : > { %v271_v48 = vadd.f32 %v267_v55, %v1347_v5  ;;  %726 = vrot.lane.b32.xlu1 %v722_v0, %s1107_s27  ;;  %v695_v5 = vmul.f32 %v1254_v14, %v693_v50  ;;  %v709_v14 = vmul.f32 %v1280_v26, %v707_v59 }
  0xc5   : > { %686 = vrot.lane.b32.xlu0 %v681_v45, %s1107_s27 }
  0xc6   : > { %v295_v51 = vpop.permute.xlu1 %294 }
  0xc7   : > { %v299_v52 = vadd.f32 %v295_v51, %v1375_v28  ;;  %v293_v53 = vpop.permute.xlu0 %292 }
  0xc8   : > { %v298_v57 = vadd.f32 %v293_v53, %v1377_v30  ;;  %656 = vrot.lane.b32.xlu1 %v652_v3, %s1107_s27  ;;  %v736_v30 = vmul.f32 %v1288_v29, %v735_v56 }
  0xc9   : > { %728 = vrot.lane.b32.xlu0 %v723_v49, %s1107_s27 }
  0xca   : > { %v309_v58 = vpop.permute.xlu1 %308 }
  0xcb   : > { %v313_v60 = vadd.f32 %v309_v58, %v1383_v36  ;;  %v307_v61 = vpop.permute.xlu0 %306  ;;  %v737_v36 = vmul.f32 %v1280_v26, %v735_v56 }
  0xcc   : > { %v312_v28 = vadd.f32 %v307_v61, %v1385_v37  ;;  %700 = vrot.lane.b32.xlu1 %v695_v5, %s1107_s27  ;;  %v749_v37 = vstv %s946_s6 }
  0xcd   : > { %698 = vrot.lane.b32.xlu0 %v694_v54, %s1107_s27  ;;  %v751_v10 = vmul.f32 %v1280_v26, %v749_v37  ;;  %v750_v11 = vmul.f32 %v1288_v29, %v749_v37 }
  0xce   : > { %v323_v62 = vpop.permute.xlu1 %322 }
  0xcf   : > { %v327_v63 = vadd.f32 %v323_v62, %v271_v48  ;;  %v321_v16 = vpop.permute.xlu0 %320 }
  0xd0   : > { %v326_v2 = vadd.f32 %v321_v16, %v270_v44  ;;  %740 = vrot.lane.b32.xlu1 %v736_v30, %s1107_s27 }
  0xd1   : > { %714 = vrot.lane.b32.xlu0 %v709_v14, %s1107_s27 }
  0xd2   : > { %v337_v6 = vpop.permute.xlu1 %336 }
  0xd3   : > { %v341_v7 = vadd.f32 %v337_v6, %v285_v47  ;;  %v335_v8 = vpop.permute.xlu0 %334 }
  0xd4   : > { %v340_v9 = vadd.f32 %v335_v8, %v284_v43  ;;  %712 = vrot.lane.b32.xlu1 %v708_v4, %s1107_s27 }
  0xd5   : > { %742 = vrot.lane.b32.xlu0 %v737_v36, %s1107_s27 }
  0xd6   : > { %v351_v12 = vpop.permute.xlu1 %350 }
  0xd7   : > { %v355_v13 = vadd.f32 %v351_v12, %v299_v52  ;;  %v349_v15 = vpop.permute.xlu0 %348 }
  0xd8   : > { %v354_v17 = vadd.f32 %v349_v15, %v298_v57  ;;  %756 = vrot.lane.b32.xlu1 %v751_v10, %s1107_s27 }
  0xd9   : > { %754 = vrot.lane.b32.xlu0 %v750_v11, %s1107_s27 }
  0xda   : > { %v365_v18 = vpop.permute.xlu1 %364 }
  0xdb   : > { %v369_v19 = vadd.f32 %v365_v18, %v313_v60  ;;  %v363_v20 = vpop.permute.xlu0 %362 }
  0xdc   : > { %v368_v21 = vadd.f32 %v363_v20, %v312_v28 }
  0xde   : > { %v393_v22 = vpop.permute.xlu1 %392 }
  0xdf   : > { %v397_v23 = vadd.f32 %v393_v22, %v341_v7  ;;  %v391_v24 = vpop.permute.xlu0 %390 }
  0xe0   : > { %v396_v26 = vadd.f32 %v391_v24, %v340_v9 }
  0xe2   : > { %v405_v25 = vpop.permute.xlu1 %404 }
  0xe3   : > { %v410_v27 = vadd.f32 %v405_v25, %v354_v17  ;;  %v379_v31 = vpop.permute.xlu0 %378 }
  0xe4   : > { %v383_v29 = vadd.f32 %v379_v31, %v327_v63 }
  0xe6   : > { %v447_v32 = vpop.permute.xlu1 %446 }
  0xe7   : > { %v452_v33 = vadd.f32 %v447_v32, %v396_v26  ;;  %v407_v34 = vpop.permute.xlu0 %406 }
  0xe8   : > { %v411_v35 = vadd.f32 %v407_v34, %v355_v13 }
  0xea   : > { %v377_v38 = vpop.permute.xlu1 %376 }
  0xeb   : > { %v382_v39 = vadd.f32 %v377_v38, %v326_v2  ;;  %v449_v40 = vpop.permute.xlu0 %448 }
  0xec   : > { %v453_v41 = vadd.f32 %v449_v40, %v397_v23 }
  0xee   : > { %v421_v42 = vpop.permute.xlu1 %420 }
  0xef   : > { %v425_v43 = vadd.f32 %v421_v42, %v369_v19  ;;  %v419_v1 = vpop.permute.xlu0 %418 }
  0xf0   : > { %v424_v44 = vadd.f32 %v419_v1, %v368_v21 }
  0xf2   : > { %v461_v0 = vpop.permute.xlu1 %460 }
  0xf3   : > { %v466_v45 = vadd.f32 %v461_v0, %v410_v27  ;;  %v435_v46 = vpop.permute.xlu0 %434 }
  0xf4   : > { %v439_v47 = vadd.f32 %v435_v46, %v383_v29 }
  0xf6   : > { %v503_v55 = vpop.permute.xlu1 %502 }
  0xf7   : > { %v508_v48 = vadd.f32 %v503_v55, %v452_v33  ;;  %v463_v3 = vpop.permute.xlu0 %462 }
  0xf8   : > { %v467_v49 = vadd.f32 %v463_v3, %v411_v35 }
  0xfa   : > { %v433_v50 = vpop.permute.xlu1 %432 }
  0xfb   : > { %v438_v51 = vadd.f32 %v433_v50, %v382_v39  ;;  %v505_v52 = vpop.permute.xlu0 %504 }
  0xfc   : > { %v509_v53 = vadd.f32 %v505_v52, %v453_v41 }
  0xfe   : > { %v477_v57 = vpop.permute.xlu1 %476 }
  0xff   : > { %v481_v5 = vadd.f32 %v477_v57, %v425_v43  ;;  %v475_v54 = vpop.permute.xlu0 %474 }
 0x100   : > { %v480_v56 = vadd.f32 %v475_v54, %v424_v44 }
 0x102   : > { %v517_v58 = vpop.permute.xlu1 %516 }
 0x103   : > { %v491_v59 = vpop.permute.xlu0 %490  ;;  %v522_v35 = vadd.f32 %v517_v58, %v466_v45 }
 0x104   : > { %v495_v33 = vadd.f32 %v491_v59, %v439_v47 }
 0x106   : > { %v559_v60 = vpop.permute.xlu1 %558 }
 0x107   : > { %v519_v61 = vpop.permute.xlu0 %518  ;;  %v564_v20 = vadd.f32 %v559_v60, %v508_v48 }
 0x108   : > { %v523_v1 = vadd.f32 %v519_v61, %v467_v49 }
 0x10a   : > { %v489_v28 = vpop.permute.xlu1 %488 }
 0x10b   : > { %v561_v30 = vpop.permute.xlu0 %560  ;;  %v494_v42 = vadd.f32 %v489_v28, %v438_v51 }
 0x10c   : > { %v565_v21 = vadd.f32 %v561_v30, %v509_v53 }
 0x10e   : > { %v533_v14 = vpop.permute.xlu1 %532 }
 0x10f   : > { %v531_v62 = vpop.permute.xlu0 %530  ;;  %v537_v53 = vadd.f32 %v533_v14, %v481_v5 }
 0x110   : > { %v536_v54 = vadd.f32 %v531_v62, %v480_v56 }
 0x112   : > { %v573_v63 = vpop.permute.xlu1 %572 }
 0x113   : > { %v547_v16 = vpop.permute.xlu0 %546  ;;  %v578_v44 = vadd.f32 %v573_v63, %v522_v35 }
 0x114   : > { %v551_v38 = vadd.f32 %v547_v16, %v495_v33 }
 0x116   : > { %v615_v2 = vpop.permute.xlu1 %614 }
 0x117   : > { %v575_v4 = vpop.permute.xlu0 %574  ;;  %v620_v22 = vadd.f32 %v615_v2, %v564_v20 }
 0x118   : > { %v579_v48 = vadd.f32 %v575_v4, %v523_v1 }
 0x11a   : > { %v545_v36 = vpop.permute.xlu1 %544 }
 0x11b   : > { %v617_v37 = vpop.permute.xlu0 %616  ;;  %v550_v55 = vadd.f32 %v545_v36, %v494_v42 }
 0x11c   : > { %v621_v26 = vadd.f32 %v617_v37, %v565_v21 }
 0x11e   : > { %v589_v6 = vpop.permute.xlu1 %588 }
 0x11f   : > { %v587_v7 = vpop.permute.xlu0 %586  ;;  %v593_v60 = vadd.f32 %v589_v6, %v537_v53 }
 0x120   : > { %v592_v51 = vadd.f32 %v587_v7, %v536_v54 }
 0x122   : > { %v629_v8 = vpop.permute.xlu1 %628 }
 0x123   : > { %v603_v9 = vpop.permute.xlu0 %602  ;;  %v634_v3 = vadd.f32 %v629_v8, %v578_v44 }
 0x124   : > { %v607_v0 = vadd.f32 %v603_v9, %v551_v38 }
 0x126   : > { %v671_v10 = vpop.permute.xlu1 %670 }
 0x127   : > { %v631_v11 = vpop.permute.xlu0 %630  ;;  %v676_v25 = vadd.f32 %v671_v10, %v620_v22 }
 0x128   : > { %v635_v45 = vadd.f32 %v631_v11, %v579_v48 }
 0x12a   : > { %v601_v12 = vpop.permute.xlu1 %600 }
 0x12b   : > { %v673_v13 = vpop.permute.xlu0 %672  ;;  %v606_v47 = vadd.f32 %v601_v12, %v550_v55 }
 0x12c   : > { %v677_v27 = vadd.f32 %v673_v13, %v621_v26 }
 0x12e   : > { %v645_v15 = vpop.permute.xlu1 %644 }
 0x12f   : > { %v643_v17 = vpop.permute.xlu0 %642  ;;  %v649_v16 = vadd.f32 %v645_v15, %v593_v60 }
 0x130   : > { %v648_v36 = vadd.f32 %v643_v17, %v592_v51 }
 0x132   : > { %v685_v18 = vpop.permute.xlu1 %684 }
 0x133   : > { %v659_v19 = vpop.permute.xlu0 %658  ;;  %v690_v58 = vadd.f32 %v685_v18, %v634_v3 }
 0x134   : > { %v663_v50 = vadd.f32 %v659_v19, %v607_v0 }
 0x136   : > { %v727_v23 = vpop.permute.xlu1 %726 }
 0x137   : > { %v687_v24 = vpop.permute.xlu0 %686  ;;  %v732_v31 = vadd.f32 %v727_v23, %v676_v25 }
 0x138   : > { %v691_v28 = vadd.f32 %v687_v24, %v635_v45 }
 0x139   : > { %v765_v39 = vrot.slane %v732_v31, 1 }
 0x13a   : > { %v657_v29 = vpop.permute.xlu1 %656 }
 0x13b   : > { %v729_v32 = vpop.permute.xlu0 %728  ;;  %v662_v30 = vadd.f32 %v657_v29, %v606_v47 }
 0x13c   : > { %v733_v34 = vadd.f32 %v729_v32, %v677_v27 }
 0x13e   : > { %v766_v40 = vrot.slane %v733_v34, 1  ;;  %v701_v41 = vpop.permute.xlu1 %700 }
 0x13f   : > { %v699_v43 = vpop.permute.xlu0 %698  ;;  %v705_v8 = vadd.f32 %v701_v41, %v649_v16 }
 0x140   : > { %v767_v46 = vsel %vm764_vm0, %v765_v39, %v766_v40  ;;  %v704_v14 = vadd.f32 %v699_v43, %v648_v36 }
 0x142   : > { %v741_v52 = vpop.permute.xlu1 %740 }
 0x143   : > { %v715_v57 = vpop.permute.xlu0 %714  ;;  %v746_v49 = vadd.f32 %v741_v52, %v690_v58 }
 0x144   : > { %v719_v59 = vadd.f32 %v715_v57, %v663_v50 }
 0x145   : > { %v775_v56 = vrot.slane %v746_v49, 2 }
 0x146   : > { %v771_v61 = vadd.f32 %v766_v40, %v719_v59  ;;  %v713_v63 = vpop.permute.xlu1 %712 }
 0x147   : > { %v718_v2 = vadd.f32 %v713_v63, %v662_v30  ;;  %v743_v4 = vpop.permute.xlu0 %742 }
 0x148   : > { %v747_v37 = vadd.f32 %v743_v4, %v691_v28 }
 0x149   : > { %v770_v5 = vadd.f32 %v767_v46, %v718_v2 }
 0x14a   : > { %v776_v62 = vrot.slane %v747_v37, 2  ;;  %v757_v9 = vpop.permute.xlu1 %756 }
 0x14b   : > { %v761_v10 = vadd.f32 %v757_v9, %v705_v8  ;;  %v755_v6 = vpop.permute.xlu0 %754 }
 0x14c   : > { %v777_v11 = vsel %vm774_vm1, %v775_v56, %v776_v62  ;;  %v781_v7 = vadd.f32 %v776_v62, %v771_v61  ;;  %v760_v12 = vadd.f32 %v755_v6, %v704_v14 }
 0x14d   : > { %v780_v13 = vadd.f32 %v777_v11, %v770_v5  ;;  %v786_v15 = vrot.slane %v761_v10, 3 }
 0x14e   : > { %v785_v18 = vrot.slane %v760_v12, 3 }
 0x14f   : > { %v791_v17 = vadd.f32 %v786_v15, %v781_v7 }
 0x150   : > { %v787_v19 = vsel %vm784_vm2, %v785_v18, %v786_v15 }
 0x151   : > { %v792_v20 = vsel %vm784_vm2, %v791_v17, 0.0  ;;  %v790_v21 = vadd.f32 %v787_v19, %v780_v13 }
 0x152   : > { %v948_v22 = vmul.f32 -1.442695, %v792_v20 }
 0x153   : > { %v947_v23 = vmul.f32 -1.442695, %v790_v21 }
 0x154   : > { %1010 = vpow2.f32 %v948_v22 }
 0x155   : > { %1012 = vpow2.f32 %v947_v23 }
 0x161   : > { %v1011_v24 = vpop.eup %1010 }
 0x162   : > { %v1013_v26 = vpop.eup %1012  ;;  %v800_v25 = vadd.f32 1.0, %v1011_v24 }
 0x163   : > { %v799_v27 = vadd.f32 1.0, %v1013_v26 }
 0x164   : > { %1014 = vrcp.f32 %v800_v25 }
 0x165   : > { %1016 = vrcp.f32 %v799_v27 }
 0x171   : > { %v1015_v31 = vpop.eup %1014 }
 0x172   : > { %v1017_v29 = vpop.eup %1016  ;;  %807 = vst.msk [vmem:[%s177_s12 + $0x8] sm:$0xff] %vm805_vm3, %v1015_v31 }
 0x173   : > { %806 = vst.msk [vmem:[%s177_s12] sm:$0xff] %vm805_vm3, %v1017_v29 }
 0x174 PF: > { %p13_p0 = scmp.ge.s32.totalorder %s1145_s14, 4   ;;  %s1538_s9 = smov %s1091_s10 }
 0x175   : > { %s1539_s10 = smov %s1095_s11  ;;  %s1540_s11 = smov %s1155_s17 }
 0x176   : > { %s1541_s12 = smov %s1145_s14  ;;  %15 = sbr.rel (!%p13_p0) target bundleno = 4 (0x4), region = 75 }
 0x17b   :  { %829 = vsyncpa [#allocation3], 1 }
 0x17c   :  { %831 = vsyncpa [#allocation3 + $0x1], 1 }
 0x17d   :  { %832 = vsyncpa [#allocation4], 1 }
 0x17e   :  { %834 = vsyncpa [#allocation4 + $0x1], 1 }

</bundles_post_ra>
